<compile_context>
chip_gen: v5e
topology: v5e:2x2
jax: 0.10.0
libtpu: 0.0.40
codegen_flags: <defaults>
</compile_context>

<pallas_src>
import numpy as np
import jax
import jax.numpy as jnp
from jax.experimental import pallas as pl
from jax.experimental.pallas import tpu as pltpu

OBS_DIM = 3        # Pendulum-v1 observation dim
ACT_DIM = 1        # Pendulum-v1 action dim
ACT_LIMIT = 2.0    # Pendulum-v1 action high
H1, H2 = 400, 300

OBS_PAD = 8        # sublane-aligned storage for w1's input dim
H1_PAD = 512       # lane-aligned (multiple of 128) hidden dims
H2_PAD = 384

_SPLIT_THRESHOLD = 512   # if a single tile would cover >= this many rows, split in 2


def _round_up(x, m):
    return (x + m - 1) // m * m


def actor_kernel(obs_ref, w1_ref, b1_ref, w2_ref, b2_ref, w3_ref, b3_ref, out_ref):
    x = obs_ref[...]                                        # (TB, 3) f32

    # ---- layer 1: K=3 contraction as 3 VPU FMAs (degenerate on the MXU) ----
    w1 = w1_ref[...]                                        # (8, 512) f32
    h1 = (b1_ref[...]
          + x[:, 0:1] * w1[0:1, :]
          + x[:, 1:2] * w1[1:2, :]
          + x[:, 2:3] * w1[2:3, :])
    h1 = jnp.maximum(h1, 0.0)                               # (TB, 512) f32

    # ---- layer 2: the only real matmul -> MXU, bf16 operands, f32 accum ----
    h2 = jnp.dot(h1.astype(jnp.bfloat16), w2_ref[...],
                 preferred_element_type=jnp.float32) + b2_ref[...]
    h2 = jnp.maximum(h2, 0.0)                               # (TB, 384) f32

    # ---- layer 3: N=1 -> VPU multiply + XLU lane reduce, skip the MXU ----
    w3 = w3_ref[...]                                        # (1, 384) f32
    z = jnp.sum(h2 * w3, axis=-1, keepdims=True) + b3_ref[...]   # (TB, 1)
    act = jnp.tanh(z) * ACT_LIMIT                           # (TB, 1)

    # Lane-dense output block: (TB, 1) -> (1, TB) is a tiny XLU relayout and
    # turns TB/8 masked vst.msk stores into unmasked full-lane stores.
    out_ref[...] = jnp.transpose(act).astype(out_ref.dtype)


def _pick_tile(B, batch_tile):
    """Choose the batch tile TB.

    Invariants required by the lane-dense (1, TB) output block:
      * TB is a multiple of 128 whenever the grid has > 1 step, OR
      * TB == B_pad (single full-array block).
    Also guarantees >= 2 grid steps on large batches so v7x megacore sharding
    ("parallel" dimension semantics) has work for both TensorCores.
    """
    B8 = _round_up(B, 8)
    batch_tile = max(128, _round_up(batch_tile, 128))
    if B8 > batch_tile:
        return batch_tile                                   # >= 2 steps guaranteed
    if B8 >= _SPLIT_THRESHOLD:
        return _round_up(pl.cdiv(B8, 2), 128)               # 2 steps for 2 TCs (v7x)
    return B8                                               # tiny batch: single step


def actor_forward(obs, packed, *, batch_tile=1024, vmem_limit_bytes=32 * 1024 * 1024):
    """obs: (B, OBS_DIM) float32. packed: dict from pack_params(). Returns (B, ACT_DIM)."""
    B = obs.shape[0]
    w1, b1, w2, b2, w3, b3 = (packed[k] for k in ("w1", "b1", "w2", "b2", "w3", "b3"))

    TB = _pick_tile(B, batch_tile)
    B_pad = _round_up(_round_up(B, 8), TB)
    if B_pad != B:
        obs = jnp.pad(obs, ((0, B_pad - B), (0, 0)))
    grid = (B_pad // TB,)

    # Weights/biases: full block, constant index_map -> stay VMEM-resident.
    # (Mosaic keeps these resident; pl.Buffered(1) single-buffering would save
    #  ~400 KiB more on v7x but is left at the default for portability.)
    const = lambda arr: pl.BlockSpec(arr.shape, lambda i: (0,) * arr.ndim)

    out_bytes = B_pad * ACT_DIM * 4
    cost = pl.CostEstimate(
        flops=2 * B_pad * (OBS_DIM * H1 + H1 * H2 + H2 * ACT_DIM),
        transcendentals=B_pad,
        bytes_accessed=int(obs.nbytes + w1.nbytes + b1.nbytes + w2.nbytes
                           + b2.nbytes + w3.nbytes + b3.nbytes + out_bytes),
    )

    out = pl.pallas_call(
        actor_kernel,
        # Lane-dense output: batch rows live on the lane axis.
        out_shape=jax.ShapeDtypeStruct((1, B_pad), jnp.float32),
        grid=grid,
        in_specs=[
            pl.BlockSpec((TB, OBS_DIM), lambda i: (i, 0)),
            const(w1), const(b1),
            const(w2), const(b2),
            const(w3), const(b3),
        ],
        out_specs=pl.BlockSpec((1, TB), lambda i: (0, i)),
        compiler_params=pltpu.CompilerParams(
            dimension_semantics=("parallel",),
            vmem_limit_bytes=vmem_limit_bytes,
        ),
        cost_estimate=cost,
    )(obs, w1, b1, w2, b2, w3, b3)

    # (1, B_pad) lane-major -> (B, ACT_DIM)
    return out.reshape(B_pad, ACT_DIM)[:B]

# TODO(synk): for latency-critical single-observation acting loops, amortize the
# ~780 KiB weight DMA by batching env observations per call or keeping weights
# VMEM-resident across calls (cross-call prefetch pattern).


def init_params(key):
    """Deterministic init mimicking PyTorch nn.Linear default (U[-1/sqrt(fan_in), +]).

    Logical (unpadded, f32) params: w is (in_features, out_features), b is (1, out)."""
    ks = jax.random.split(key, 6)

    def linear(kw, kb, fan_in, fan_out):
        bound = 1.0 / np.sqrt(fan_in)
        w = jax.random.uniform(kw, (fan_in, fan_out), jnp.float32, -bound, bound)
        b = jax.random.uniform(kb, (1, fan_out), jnp.float32, -bound, bound)
        return w, b

    w1, b1 = linear(ks[0], ks[1], OBS_DIM, H1)
    w2, b2 = linear(ks[2], ks[3], H1, H2)
    w3, b3 = linear(ks[4], ks[5], H2, ACT_DIM)
    return dict(w1=w1, b1=b1, w2=w2, b2=b2, w3=w3, b3=b3)


def pack_params(p):
    """Pad to lane/sublane-friendly shapes. Only w2 (the MXU matmul) is bf16;
    w1/w3 and all biases stay f32 (VPU/XLU path, negligible VMEM)."""
    w1 = jnp.zeros((OBS_PAD, H1_PAD), jnp.float32).at[:OBS_DIM, :H1].set(p["w1"])
    b1 = jnp.zeros((1, H1_PAD), jnp.float32).at[:, :H1].set(p["b1"])
    w2 = jnp.zeros((H1_PAD, H2_PAD), jnp.bfloat16).at[:H1, :H2].set(
        p["w2"].astype(jnp.bfloat16))
    b2 = jnp.zeros((1, H2_PAD), jnp.float32).at[:, :H2].set(p["b2"])
    w3 = jnp.zeros((1, H2_PAD), jnp.float32).at[:, :H2].set(p["w3"].reshape(1, H2))
    b3 = p["b3"].reshape(1, 1).astype(jnp.float32)
    return dict(w1=w1, b1=b1, w2=w2, b2=b2, w3=w3, b3=b3)


def actor_reference_f32(obs, p):
    """Pure-f32 PyTorch-equivalent reference (original, unquantized weights)."""
    h1 = jnp.maximum(obs @ p["w1"] + p["b1"], 0.0)
    h2 = jnp.maximum(h1 @ p["w2"] + p["b2"], 0.0)
    return jnp.tanh(h2 @ p["w3"] + p["b3"]) * ACT_LIMIT


def actor_reference_packed(obs, pp):
    """Reference mirroring the exact numerics the kernel uses
    (f32 layer 1/3, bf16 h1 and bf16 w2 into the layer-2 matmul)."""
    w1 = pp["w1"][:OBS_DIM]                                   # (3, 512) f32
    h1 = jnp.maximum(obs @ w1 + pp["b1"], 0.0)
    h2 = jnp.dot(h1.astype(jnp.bfloat16), pp["w2"],
                 preferred_element_type=jnp.float32) + pp["b2"]
    h2 = jnp.maximum(h2, 0.0)
    z = jnp.sum(h2 * pp["w3"], axis=-1, keepdims=True) + pp["b3"]
    return jnp.tanh(z) * ACT_LIMIT


if __name__ == "__main__":
    key = jax.random.PRNGKey(0)
    k_obs, k_obs2, k_obs3, k_params = jax.random.split(key, 4)

    raw = init_params(k_params)
    packed = pack_params(raw)

    # --- small single-tile case (B=8 -> TB=8, grid=1) ---
    obs = jax.random.normal(k_obs, (8, OBS_DIM), dtype=jnp.float32)
    out = actor_forward(obs, packed)
    jax.block_until_ready(out)

    # kernel vs reference with identical quantization (kernel math check)
    np.testing.assert_allclose(np.asarray(out),
                               np.asarray(actor_reference_packed(obs, packed)),
                               rtol=1e-2, atol=1e-2)
    # kernel vs full-f32 PyTorch-equivalent reference (bf16 layer-2 quant only)
    np.testing.assert_allclose(np.asarray(out),
                               np.asarray(actor_reference_f32(obs, raw)),
                               rtol=5e-2, atol=5e-2)

    # --- multi-tile case: B=300, TB=128 -> grid=3, padded rows, lane-dense out ---
    obs2 = jax.random.normal(k_obs2, (300, OBS_DIM), dtype=jnp.float32)
    out2 = actor_forward(obs2, packed, batch_tile=128)
    jax.block_until_ready(out2)
    np.testing.assert_allclose(np.asarray(out2),
                               np.asarray(actor_reference_packed(obs2, packed)),
                               rtol=1e-2, atol=1e-2)

    # --- megacore split path: B=600 <= default tile but >= 512 -> TB=384, grid=2 ---
    obs3 = jax.random.normal(k_obs3, (600, OBS_DIM), dtype=jnp.float32)
    out3 = actor_forward(obs3, packed)
    jax.block_until_ready(out3)
    np.testing.assert_allclose(np.asarray(out3),
                               np.asarray(actor_reference_packed(obs3, packed)),
                               rtol=1e-2, atol=1e-2)

    print("KERNEL_OK")
</pallas_src>

<mosaic_0001>
module attributes {stable_mosaic.version = 11 : i64} {
  func.func @actor_kernel(%arg0: i32, %arg1: memref<8x3xf32, #tpu.memory_space<vmem>>, %arg2: memref<8x512xf32, #tpu.memory_space<vmem>>, %arg3: memref<1x512xf32, #tpu.memory_space<vmem>>, %arg4: memref<512x384xbf16, #tpu.memory_space<vmem>>, %arg5: memref<1x384xf32, #tpu.memory_space<vmem>>, %arg6: memref<1x384xf32, #tpu.memory_space<vmem>>, %arg7: memref<1x1xf32, #tpu.memory_space<vmem>>, %arg8: memref<1x8xf32, #tpu.memory_space<vmem>>) attributes {dimension_semantics = [#tpu.dimension_semantics<parallel>], iteration_bounds = array<i64: 1>, scalar_prefetch = 0 : i64, scratch_operands = 0 : i64, tpu.core_type = #tpu.core_type<tc>, window_params = [{transform_indices = @transform_0, window_bounds = array<i64: 8, 3>}, {pipeline_mode = #tpu.pipeline_mode<synchronous>, transform_indices = @transform_1, window_bounds = array<i64: 8, 512>}, {pipeline_mode = #tpu.pipeline_mode<synchronous>, transform_indices = @transform_2, window_bounds = array<i64: 1, 512>}, {pipeline_mode = #tpu.pipeline_mode<synchronous>, transform_indices = @transform_3, window_bounds = array<i64: 512, 384>}, {pipeline_mode = #tpu.pipeline_mode<synchronous>, transform_indices = @transform_4, window_bounds = array<i64: 1, 384>}, {pipeline_mode = #tpu.pipeline_mode<synchronous>, transform_indices = @transform_5, window_bounds = array<i64: 1, 384>}, {pipeline_mode = #tpu.pipeline_mode<synchronous>, transform_indices = @transform_6, window_bounds = array<i64: 1, 1>}, {transform_indices = @transform_7, window_bounds = array<i64: 1, 8>}]} {
    %c0 = arith.constant 0 : index
    %c0_0 = arith.constant 0 : index
    %0 = vector.load %arg1[%c0, %c0_0] : memref<8x3xf32, #tpu.memory_space<vmem>>, vector<8x3xf32>
    %c0_1 = arith.constant 0 : index
    %c0_2 = arith.constant 0 : index
    %1 = vector.load %arg2[%c0_1, %c0_2] : memref<8x512xf32, #tpu.memory_space<vmem>>, vector<8x512xf32>
    %c0_3 = arith.constant 0 : index
    %c0_4 = arith.constant 0 : index
    %2 = vector.load %arg3[%c0_3, %c0_4] : memref<1x512xf32, #tpu.memory_space<vmem>>, vector<1x512xf32>
    %3 = vector.extract_strided_slice %0 {offsets = [0, 0], sizes = [8, 1], strides = [1, 1]} : vector<8x3xf32> to vector<8x1xf32>
    %4 = vector.extract_strided_slice %1 {offsets = [0, 0], sizes = [1, 512], strides = [1, 1]} : vector<8x512xf32> to vector<1x512xf32>
    %5 = vector.broadcast %3 : vector<8x1xf32> to vector<8x512xf32>
    %6 = vector.broadcast %4 : vector<1x512xf32> to vector<8x512xf32>
    %7 = arith.mulf %5, %6 : vector<8x512xf32>
    %8 = vector.broadcast %2 : vector<1x512xf32> to vector<8x512xf32>
    %9 = arith.addf %8, %7 : vector<8x512xf32>
    %10 = vector.extract_strided_slice %0 {offsets = [0, 1], sizes = [8, 1], strides = [1, 1]} : vector<8x3xf32> to vector<8x1xf32>
    %11 = vector.extract_strided_slice %1 {offsets = [1, 0], sizes = [1, 512], strides = [1, 1]} : vector<8x512xf32> to vector<1x512xf32>
    %12 = vector.broadcast %10 : vector<8x1xf32> to vector<8x512xf32>
    %13 = vector.broadcast %11 : vector<1x512xf32> to vector<8x512xf32>
    %14 = arith.mulf %12, %13 : vector<8x512xf32>
    %15 = arith.addf %9, %14 : vector<8x512xf32>
    %16 = vector.extract_strided_slice %0 {offsets = [0, 2], sizes = [8, 1], strides = [1, 1]} : vector<8x3xf32> to vector<8x1xf32>
    %17 = vector.extract_strided_slice %1 {offsets = [2, 0], sizes = [1, 512], strides = [1, 1]} : vector<8x512xf32> to vector<1x512xf32>
    %18 = vector.broadcast %16 : vector<8x1xf32> to vector<8x512xf32>
    %19 = vector.broadcast %17 : vector<1x512xf32> to vector<8x512xf32>
    %20 = arith.mulf %18, %19 : vector<8x512xf32>
    %21 = arith.addf %15, %20 : vector<8x512xf32>
    %cst = arith.constant 0.000000e+00 : f32
    %22 = vector.broadcast %cst : f32 to vector<8x512xf32>
    %23 = arith.maximumf %21, %22 : vector<8x512xf32>
    %24 = arith.truncf %23 : vector<8x512xf32> to vector<8x512xbf16>
    %c0_5 = arith.constant 0 : index
    %c0_6 = arith.constant 0 : index
    %25 = vector.load %arg4[%c0_5, %c0_6] : memref<512x384xbf16, #tpu.memory_space<vmem>>, vector<512x384xbf16>
    %cst_7 = arith.constant dense<0.000000e+00> : vector<8x384xf32>
    %26 = tpu.matmul %24, %25, %cst_7 {dimension_numbers = #tpu.dot_dimension_numbers<[1], [0], [0], [1], [0, 0, 1, 1], [], []>} : vector<8x512xbf16>, vector<512x384xbf16>, vector<8x384xf32> -> vector<8x384xf32>
    %c0_8 = arith.constant 0 : index
    %c0_9 = arith.constant 0 : index
    %27 = vector.load %arg5[%c0_8, %c0_9] : memref<1x384xf32, #tpu.memory_space<vmem>>, vector<1x384xf32>
    %28 = vector.broadcast %27 : vector<1x384xf32> to vector<8x384xf32>
    %29 = arith.addf %26, %28 : vector<8x384xf32>
    %cst_10 = arith.constant 0.000000e+00 : f32
    %30 = vector.broadcast %cst_10 : f32 to vector<8x384xf32>
    %31 = arith.maximumf %29, %30 : vector<8x384xf32>
    %c0_11 = arith.constant 0 : index
    %c0_12 = arith.constant 0 : index
    %32 = vector.load %arg6[%c0_11, %c0_12] : memref<1x384xf32, #tpu.memory_space<vmem>>, vector<1x384xf32>
    %33 = vector.broadcast %32 : vector<1x384xf32> to vector<8x384xf32>
    %34 = arith.mulf %31, %33 : vector<8x384xf32>
    %cst_13 = arith.constant dense<0.000000e+00> : vector<8xf32>
    %35 = vector.multi_reduction <add>, %34, %cst_13 [1] : vector<8x384xf32> to vector<8xf32>
    %36 = vector.shape_cast %35 : vector<8xf32> to vector<8x1xf32>
    %c0_14 = arith.constant 0 : index
    %c0_15 = arith.constant 0 : index
    %37 = vector.load %arg7[%c0_14, %c0_15] : memref<1x1xf32, #tpu.memory_space<vmem>>, vector<1x1xf32>
    %38 = vector.broadcast %37 : vector<1x1xf32> to vector<8x1xf32>
    %39 = arith.addf %36, %38 : vector<8x1xf32>
    %40 = math.tanh %39 : vector<8x1xf32>
    %cst_16 = arith.constant 2.000000e+00 : f32
    %41 = vector.broadcast %cst_16 : f32 to vector<8x1xf32>
    %42 = arith.mulf %40, %41 : vector<8x1xf32>
    %43 = tpu.transpose %42, [1, 0] : vector<8x1xf32> -> vector<1x8xf32>
    %c0_17 = arith.constant 0 : index
    %c0_18 = arith.constant 0 : index
    %44 = vector.load %arg8[%c0_17, %c0_18] : memref<1x8xf32, #tpu.memory_space<vmem>>, vector<1x8xf32>
    tpu.vector_store %arg8[%c0_17, %c0_18], %43 {strides = array<i32>} : memref<1x8xf32, #tpu.memory_space<vmem>>, vector<1x8xf32>,
    return
  }
  func.func @transform_0(%arg0: i32) -> (i32, i32) {
    %c0_i32 = arith.constant 0 : i32
    %c0_i32_0 = arith.constant 0 : i32
    return %arg0, %c0_i32 : i32, i32
  }
  func.func @transform_1(%arg0: i32) -> (i32, i32) {
    %c0_i32 = arith.constant 0 : i32
    %c0_i32_0 = arith.constant 0 : i32
    %c0_i32_1 = arith.constant 0 : i32
    return %c0_i32, %c0_i32_0 : i32, i32
  }
  func.func @transform_2(%arg0: i32) -> (i32, i32) {
    %c0_i32 = arith.constant 0 : i32
    %c0_i32_0 = arith.constant 0 : i32
    %c0_i32_1 = arith.constant 0 : i32
    return %c0_i32, %c0_i32_0 : i32, i32
  }
  func.func @transform_3(%arg0: i32) -> (i32, i32) {
    %c0_i32 = arith.constant 0 : i32
    %c0_i32_0 = arith.constant 0 : i32
    %c0_i32_1 = arith.constant 0 : i32
    return %c0_i32, %c0_i32_0 : i32, i32
  }
  func.func @transform_4(%arg0: i32) -> (i32, i32) {
    %c0_i32 = arith.constant 0 : i32
    %c0_i32_0 = arith.constant 0 : i32
    %c0_i32_1 = arith.constant 0 : i32
    return %c0_i32, %c0_i32_0 : i32, i32
  }
  func.func @transform_5(%arg0: i32) -> (i32, i32) {
    %c0_i32 = arith.constant 0 : i32
    %c0_i32_0 = arith.constant 0 : i32
    %c0_i32_1 = arith.constant 0 : i32
    return %c0_i32, %c0_i32_0 : i32, i32
  }
  func.func @transform_6(%arg0: i32) -> (i32, i32) {
    %c0_i32 = arith.constant 0 : i32
    %c0_i32_0 = arith.constant 0 : i32
    %c0_i32_1 = arith.constant 0 : i32
    return %c0_i32, %c0_i32_0 : i32, i32
  }
  func.func @transform_7(%arg0: i32) -> (i32, i32) {
    %c0_i32 = arith.constant 0 : i32
    %c0_i32_0 = arith.constant 0 : i32
    return %c0_i32, %arg0 : i32, i32
  }
}

</mosaic_0001>

<bundles_post_ra>
// kernel: tpu_custom_call.1
= control target key start
LH: loop header
LB: loop body
LE: loop exit
PB: predicated region body
PF: predicated region fallthrough
CT: control target
= control target key end

     0   :  { %s1680_s0 = inlined_call_operand.vmem [shape: f32[8,3], index: 0, kind: input, shape index: {}]   ;;  %s1681_s1 = inlined_call_operand.hbm [shape: f32[8,512], index: 1, kind: input, shape index: {}]   ;;  %s1682_s2 = inlined_call_operand.vmem [shape: f32[1,512], index: 2, kind: input, shape index: {}]   ;;  %s1683_s3 = inlined_call_operand.hbm [shape: bf16[512,384], index: 3, kind: input, shape index: {}]   ;;  %s1684_s4 = inlined_call_operand.vmem [shape: f32[1,384], index: 4, kind: input, shape index: {}]   ;;  %s1685_s5 = inlined_call_operand.vmem [shape: f32[1,384], index: 5, kind: input, shape index: {}]   ;;  %s1686_s6 = inlined_call_operand.<no memory space> [shape: f32[1,1], index: 6, kind: input, shape index: {}]   ;;  %s1687_s7 = inlined_call_operand.hbm [shape: f32[1,8], index: 7, kind: output, shape index: {}]  }
   0x1   :  { %v12_v0 = vstv %s1686_s6 }
   0x2   :  { %13 = vst [vmem:[#allocation2] sm:$0x1] %v12_v0 }
   0x3   :  { %14 = vsyncpa [#allocation4], 0 }
   0x4   :  { %15 = vsyncpa [#allocation7], 0 }
   0x5   :  { %16 = vsyncpa [#allocation5], 0  ;;  %s24_s28 = sshll.u32 %s1681_s1, 4  ;;  %s1586_s29 = smov [#allocation3]   ;;  %s25_s28 = int_to_ptr.hbm [resolvable:$true] %s24_s28 }
   0x6   :  { %s26_s30 = sshll.u32 %s1586_s29, 4  ;;  %s36_s10 = sshll.u32 %s1683_s3, 4  ;;  %s27_s30 = int_to_ptr.vmem [resolvable:$true] %s26_s30  ;;  %s37_s10 = int_to_ptr.hbm [resolvable:$true] %s36_s10 }
   0x7   :  { %29 = dma.hbm_to_vmem [thread:$0]  %s25_s28, 512, %s27_s30, [#allocation4]  }
   0x8   :  { %s1587_s11 = smov [#allocation6]   ;;  %s1588_s12 = smov 192  }
   0x9   :  { %s38_s6 = sshll.u32 %s1587_s11, 4  ;;  %s1589_s13 = smov 12   ;;  %s39_s6 = int_to_ptr.vmem [resolvable:$true] %s38_s6 }
   0xa   :  { %44 = dma.hbm_to_vmem [thread:$0]  %s37_s10, 12288, %s39_s6, [#allocation7], %s1588_s12, %s1588_s12, %s1589_s13  }
   0xb   :  { %1580 = dma.done.wait [#allocation4], 512  }
   0xc   :  { %1581 = vsyncadd [#allocation4], 4294966784 }
   0xd   :  { %1582 = dma.done.wait [#allocation7], 12288  }
   0xe   :  { %1583 = vsyncadd [#allocation7], 4294955008  ;;  %v1590_v1 = vmov 0   ;;  %v1591_v2 = vmov 2   ;;  %v59_v3 = vld [vmem:[%s1680_s0] sm:$0xff]  ;;  %v1592_v40 = vmov 1  }
   0xf   :  { %1501 = vset.pattern.permute.xlu0 %v1590_v1  ;;  %1503 = vset.pattern.permute.xlu1 %v1591_v2  ;;  %v1098_v4 = vld [vmem:[#allocation6 + $0xa8] sm:$0xf]  ;;  %v1418_v5 = vld [vmem:[#allocation6 + $0xb0] sm:$0xf0]  ;;  %v1086_v16 = vld [vmem:[#allocation6 + $0x90] sm:$0xf] }
  0x10   :  { %67 = vperm.xlu0 %1501, %v59_v3   ;;  %108 = vperm.xlu1 %1503, %v59_v3   ;;  %v1099_v6 = vor.u32 %v1418_v5, %v1098_v4  ;;  %v1194_v7 = vld [vmem:[#allocation6 + $0x168] sm:$0xf]  ;;  %v1442_v8 = vld [vmem:[#allocation6 + $0x170] sm:$0xf0]  ;;  %v1415_v17 = vld [vmem:[#allocation6 + $0x98] sm:$0xf0] }
  0x11   :  { %v1290_v9 = vld [vmem:[#allocation6 + $0x228] sm:$0xf]  ;;  %v1195_v10 = vor.u32 %v1442_v8, %v1194_v7  ;;  %v1466_v11 = vld [vmem:[#allocation6 + $0x230] sm:$0xf0]  ;;  %v1182_v18 = vld [vmem:[#allocation6 + $0x150] sm:$0xf]  ;;  %v1087_v19 = vor.u32 %v1415_v17, %v1086_v16 }
  0x12   :  { %v1386_v12 = vld [vmem:[#allocation6 + $0x2e8] sm:$0xf]  ;;  %v1490_v13 = vld [vmem:[#allocation6 + $0x2f0] sm:$0xf0]  ;;  %779 = vmatpush.bf16.msra.mxu0 %v1099_v6  ;;  %v1291_v14 = vor.u32 %v1466_v11, %v1290_v9  ;;  %v1439_v20 = vld [vmem:[#allocation6 + $0x158] sm:$0xf0] }
  0x13   :  { %v1387_v15 = vor.u32 %v1490_v13, %v1386_v12  ;;  %792 = vmatpush.bf16.msra.mxu1 %v1195_v10  ;;  %v1278_v21 = vld [vmem:[#allocation6 + $0x210] sm:$0xf]  ;;  %v1463_v22 = vld [vmem:[#allocation6 + $0x218] sm:$0xf0]  ;;  %v1183_v23 = vor.u32 %v1439_v20, %v1182_v18  ;;  %v1074_v27 = vld [vmem:[#allocation6 + $0x78] sm:$0xf] }
  0x14   :  { %805 = vmatpush.bf16.msra.mxu2 %v1291_v14  ;;  %v1279_v24 = vor.u32 %v1463_v22, %v1278_v21  ;;  %v1374_v25 = vld [vmem:[#allocation6 + $0x2d0] sm:$0xf]  ;;  %v1487_v26 = vld [vmem:[#allocation6 + $0x2d8] sm:$0xf0]  ;;  %v1412_v29 = vld [vmem:[#allocation6 + $0x80] sm:$0xf0] }
  0x15   :  { %818 = vmatpush.bf16.msra.mxu3 %v1387_v15  ;;  %v1375_v28 = vor.u32 %v1487_v26, %v1374_v25  ;;  %v1170_v30 = vld [vmem:[#allocation6 + $0x138] sm:$0xf]  ;;  %v1436_v31 = vld [vmem:[#allocation6 + $0x140] sm:$0xf0]  ;;  %v1075_v32 = vor.u32 %v1412_v29, %v1074_v27  ;;  %v1062_v38 = vld [vmem:[#allocation6 + $0x60] sm:$0xf] }
  0x16   :  { %780 = vmatpush.bf16.msra.mxu0 %v1087_v19  ;;  %v1266_v33 = vld [vmem:[#allocation6 + $0x1f8] sm:$0xf]  ;;  %v1460_v34 = vld [vmem:[#allocation6 + $0x200] sm:$0xf0]  ;;  %v1171_v36 = vor.u32 %v1436_v31, %v1170_v30  ;;  %v1409_v39 = vld [vmem:[#allocation6 + $0x68] sm:$0xf0] }
  0x17   :  { %v1362_v35 = vld [vmem:[#allocation6 + $0x2b8] sm:$0xf]  ;;  %793 = vmatpush.bf16.msra.mxu1 %v1183_v23  ;;  %v1484_v37 = vld [vmem:[#allocation6 + $0x2c0] sm:$0xf0]  ;;  %v1267_v41 = vor.u32 %v1460_v34, %v1266_v33  ;;  %v1158_v42 = vld [vmem:[#allocation6 + $0x120] sm:$0xf]  ;;  %v1063_v47 = vor.u32 %v1409_v39, %v1062_v38 }
  0x18   :  { %1502 = vset.pattern.permute.xlu0 %v1592_v40  ;;  %806 = vmatpush.bf16.msra.mxu2 %v1279_v24  ;;  %v1433_v43 = vld [vmem:[#allocation6 + $0x128] sm:$0xf0]  ;;  %v1363_v44 = vor.u32 %v1484_v37, %v1362_v35  ;;  %v1254_v45 = vld [vmem:[#allocation6 + $0x1e0] sm:$0xf]  ;;  %v1050_v51 = vld [vmem:[#allocation6 + $0x48] sm:$0xf] }
  0x19   :  { %92 = vperm.xlu0 %1502, %v59_v3   ;;  %819 = vmatpush.bf16.msra.mxu3 %v1375_v28  ;;  %v1457_v46 = vld [vmem:[#allocation6 + $0x1e8] sm:$0xf0]  ;;  %v1350_v48 = vld [vmem:[#allocation6 + $0x2a0] sm:$0xf]  ;;  %v1159_v50 = vor.u32 %v1433_v43, %v1158_v42  ;;  %v1406_v52 = vld [vmem:[#allocation6 + $0x50] sm:$0xf0] }
  0x1a   :  { %781 = vmatpush.bf16.msra.mxu0 %v1075_v32  ;;  %v1481_v49 = vld [vmem:[#allocation6 + $0x2a8] sm:$0xf0]  ;;  %v1255_v53 = vor.u32 %v1457_v46, %v1254_v45  ;;  %v1146_v54 = vld [vmem:[#allocation6 + $0x108] sm:$0xf]  ;;  %v1430_v55 = vld [vmem:[#allocation6 + $0x110] sm:$0xf0]  ;;  %v1051_v59 = vor.u32 %v1406_v52, %v1050_v51 }
  0x1b   :  { %794 = vmatpush.bf16.msra.mxu1 %v1171_v36  ;;  %v1351_v56 = vor.u32 %v1481_v49, %v1350_v48  ;;  %v1242_v57 = vld [vmem:[#allocation6 + $0x1c8] sm:$0xf]  ;;  %v1454_v58 = vld [vmem:[#allocation6 + $0x1d0] sm:$0xf0]  ;;  %v1147_v62 = vor.u32 %v1430_v55, %v1146_v54  ;;  %v1038_v63 = vld [vmem:[#allocation6 + $0x30] sm:$0xf] }
  0x1c   :  { %807 = vmatpush.bf16.msra.mxu2 %v1267_v41  ;;  %v1338_v60 = vld [vmem:[#allocation6 + $0x288] sm:$0xf]  ;;  %v1478_v61 = vld [vmem:[#allocation6 + $0x290] sm:$0xf0]  ;;  %v1403_v0 = vld [vmem:[#allocation6 + $0x38] sm:$0xf0]  ;;  %v1243_v1 = vor.u32 %v1454_v58, %v1242_v57 }
  0x1d   :  { %820 = vmatpush.bf16.msra.mxu3 %v1363_v44  ;;  %v1134_v3 = vld [vmem:[#allocation6 + $0xf0] sm:$0xf]  ;;  %v1427_v4 = vld [vmem:[#allocation6 + $0xf8] sm:$0xf0]  ;;  %v1339_v5 = vor.u32 %v1478_v61, %v1338_v60  ;;  %v1039_v8 = vor.u32 %v1403_v0, %v1038_v63  ;;  %v1026_v12 = vld [vmem:[#allocation6 + $0x18] sm:$0xf] }
  0x1e   :  { %782 = vmatpush.bf16.msra.mxu0 %v1063_v47  ;;  %v1230_v6 = vld [vmem:[#allocation6 + $0x1b0] sm:$0xf]  ;;  %v1451_v7 = vld [vmem:[#allocation6 + $0x1b8] sm:$0xf0]  ;;  %v1135_v11 = vor.u32 %v1427_v4, %v1134_v3  ;;  %v1400_v13 = vld [vmem:[#allocation6 + $0x20] sm:$0xf0] }
  0x1f   :  { %795 = vmatpush.bf16.msra.mxu1 %v1159_v50  ;;  %v1326_v9 = vld [vmem:[#allocation6 + $0x270] sm:$0xf]  ;;  %v1475_v10 = vld [vmem:[#allocation6 + $0x278] sm:$0xf0]  ;;  %v1231_v14 = vor.u32 %v1451_v7, %v1230_v6  ;;  %v1122_v15 = vld [vmem:[#allocation6 + $0xd8] sm:$0xf]  ;;  %v1027_v21 = vor.u32 %v1400_v13, %v1026_v12 }
  0x20   :  { %808 = vmatpush.bf16.msra.mxu2 %v1255_v53  ;;  %v1424_v16 = vld [vmem:[#allocation6 + $0xe0] sm:$0xf0]  ;;  %v1327_v17 = vor.u32 %v1475_v10, %v1326_v9  ;;  %v1218_v18 = vld [vmem:[#allocation6 + $0x198] sm:$0xf]  ;;  %v1014_v22 = vld [vmem:[#allocation6] sm:$0xf] }
  0x21   :  { %821 = vmatpush.bf16.msra.mxu3 %v1351_v56  ;;  %1504 = vset.pattern.permute.xlu0 %v1591_v2  ;;  %v1448_v19 = vld [vmem:[#allocation6 + $0x1a0] sm:$0xf0]  ;;  %v1314_v20 = vld [vmem:[#allocation6 + $0x258] sm:$0xf]  ;;  %v1397_v23 = vld [vmem:[#allocation6 + $0x8] sm:$0xf0]  ;;  %v1123_v24 = vor.u32 %v1424_v16, %v1122_v15 }
  0x22   :  { %783 = vmatpush.bf16.msra.mxu0 %v1051_v59  ;;  %v1472_v2 = vld [vmem:[#allocation6 + $0x260] sm:$0xf0]  ;;  %v1110_v25 = vld [vmem:[#allocation6 + $0xc0] sm:$0xf]  ;;  %v1421_v26 = vld [vmem:[#allocation6 + $0xc8] sm:$0xf0]  ;;  %v1219_v28 = vor.u32 %v1448_v19, %v1218_v18  ;;  %v1015_v36 = vor.u32 %v1397_v23, %v1014_v22 }
  0x23   :  { %796 = vmatpush.bf16.msra.mxu1 %v1147_v62  ;;  %v1206_v27 = vld [vmem:[#allocation6 + $0x180] sm:$0xf]  ;;  %v1445_v29 = vld [vmem:[#allocation6 + $0x188] sm:$0xf0]  ;;  %v1100_v31 = vld [vmem:[#allocation6 + $0xb4] sm:$0xf0]  ;;  %v1315_v32 = vor.u32 %v1472_v2, %v1314_v20  ;;  %v1111_v40 = vor.u32 %v1421_v26, %v1110_v25 }
  0x24   :  { %809 = vmatpush.bf16.msra.mxu2 %v1243_v1  ;;  %v1417_v30 = vld [vmem:[#allocation6 + $0xac] sm:$0xf]  ;;  %v1302_v33 = vld [vmem:[#allocation6 + $0x240] sm:$0xf]  ;;  %v1196_v35 = vld [vmem:[#allocation6 + $0x174] sm:$0xf0]  ;;  %v1207_v44 = vor.u32 %v1445_v29, %v1206_v27 }
  0x25   :  { %822 = vmatpush.bf16.msra.mxu3 %v1339_v5  ;;  %v1441_v34 = vld [vmem:[#allocation6 + $0x16c] sm:$0xf]  ;;  %v1292_v39 = vld [vmem:[#allocation6 + $0x234] sm:$0xf0]  ;;  %v1103_v41 = vor.u32 %v1417_v30, %v1100_v31  ;;  %v1414_v46 = vld [vmem:[#allocation6 + $0x94] sm:$0xf] }
  0x26   :  { %784 = vmatpush.bf16.msra.mxu0 %v1039_v8  ;;  %v1469_v37 = vld [vmem:[#allocation6 + $0x248] sm:$0xf0]  ;;  %v1388_v43 = vld [vmem:[#allocation6 + $0x2f4] sm:$0xf0]  ;;  %v1199_v45 = vor.u32 %v1441_v34, %v1196_v35  ;;  %v1088_v47 = vld [vmem:[#allocation6 + $0x9c] sm:$0xf0] }
  0x27   :  { %797 = vmatpush.bf16.msra.mxu1 %v1135_v11  ;;  %v1465_v38 = vld [vmem:[#allocation6 + $0x22c] sm:$0xf]  ;;  %v1303_v48 = vor.u32 %v1469_v37, %v1302_v33  ;;  %v1438_v50 = vld [vmem:[#allocation6 + $0x154] sm:$0xf]  ;;  %v1184_v51 = vld [vmem:[#allocation6 + $0x15c] sm:$0xf0]  ;;  %v1091_v55 = vor.u32 %v1414_v46, %v1088_v47 }
  0x28   :  { %810 = vmatpush.bf16.msra.mxu2 %v1231_v14  ;;  %v1489_v42 = vld [vmem:[#allocation6 + $0x2ec] sm:$0xf]  ;;  %v1295_v49 = vor.u32 %v1465_v38, %v1292_v39  ;;  %v1462_v53 = vld [vmem:[#allocation6 + $0x214] sm:$0xf]  ;;  %v1280_v54 = vld [vmem:[#allocation6 + $0x21c] sm:$0xf0]  ;;  %v1187_v58 = vor.u32 %v1438_v50, %v1184_v51 }
  0x29   :  { %823 = vmatpush.bf16.msra.mxu3 %v1327_v17  ;;  %v1391_v52 = vor.u32 %v1489_v42, %v1388_v43  ;;  %v1486_v56 = vld [vmem:[#allocation6 + $0x2d4] sm:$0xf]  ;;  %v1376_v57 = vld [vmem:[#allocation6 + $0x2dc] sm:$0xf0]  ;;  %v1411_v59 = vld [vmem:[#allocation6 + $0x7c] sm:$0xf]  ;;  %v1283_v61 = vor.u32 %v1462_v53, %v1280_v54 }
  0x2a   :  { %785 = vmatpush.bf16.msra.mxu0 %v1027_v21  ;;  %v1076_v60 = vld [vmem:[#allocation6 + $0x84] sm:$0xf0]  ;;  %v1435_v62 = vld [vmem:[#allocation6 + $0x13c] sm:$0xf]  ;;  %v1379_v0 = vor.u32 %v1486_v56, %v1376_v57  ;;  %v1408_v10 = vld [vmem:[#allocation6 + $0x64] sm:$0xf] }
  0x2b   :  { %798 = vmatpush.bf16.msra.mxu1 %v1123_v24  ;;  %v1172_v63 = vld [vmem:[#allocation6 + $0x144] sm:$0xf0]  ;;  %v1459_v1 = vld [vmem:[#allocation6 + $0x1fc] sm:$0xf]  ;;  %v1079_v4 = vor.u32 %v1411_v59, %v1076_v60  ;;  %v1064_v11 = vld [vmem:[#allocation6 + $0x6c] sm:$0xf0] }
  0x2c   :  { %811 = vmatpush.bf16.msra.mxu2 %v1219_v28  ;;  %v1268_v3 = vld [vmem:[#allocation6 + $0x204] sm:$0xf0]  ;;  %v1483_v5 = vld [vmem:[#allocation6 + $0x2bc] sm:$0xf]  ;;  %v1175_v7 = vor.u32 %v1435_v62, %v1172_v63  ;;  %v1432_v12 = vld [vmem:[#allocation6 + $0x124] sm:$0xf]  ;;  %v1067_v13 = vor.u32 %v1408_v10, %v1064_v11 }
  0x2d   :  { %824 = vmatpush.bf16.msra.mxu3 %v1315_v32  ;;  %v1364_v6 = vld [vmem:[#allocation6 + $0x2c4] sm:$0xf0]  ;;  %v1271_v8 = vor.u32 %v1459_v1, %v1268_v3  ;;  %v1160_v14 = vld [vmem:[#allocation6 + $0x12c] sm:$0xf0]  ;;  %v1456_v15 = vld [vmem:[#allocation6 + $0x1e4] sm:$0xf] }
  0x2e   :  { %786 = vmatpush.bf16.msra.mxu0 %v1015_v36  ;;  %v1367_v9 = vor.u32 %v1483_v5, %v1364_v6  ;;  %v1256_v16 = vld [vmem:[#allocation6 + $0x1ec] sm:$0xf0]  ;;  %v1163_v17 = vor.u32 %v1432_v12, %v1160_v14  ;;  %v1480_v19 = vld [vmem:[#allocation6 + $0x2a4] sm:$0xf]  ;;  %v1405_v21 = vld [vmem:[#allocation6 + $0x4c] sm:$0xf] }
  0x2f   :  { %799 = vmatpush.bf16.msra.mxu1 %v1111_v40  ;;  %v1259_v18 = vor.u32 %v1456_v15, %v1256_v16  ;;  %v1352_v20 = vld [vmem:[#allocation6 + $0x2ac] sm:$0xf0]  ;;  %v1052_v22 = vld [vmem:[#allocation6 + $0x54] sm:$0xf0]  ;;  %v1429_v23 = vld [vmem:[#allocation6 + $0x10c] sm:$0xf] }
  0x30   :  { %812 = vmatpush.bf16.msra.mxu2 %v1207_v44  ;;  %v1355_v2 = vor.u32 %v1480_v19, %v1352_v20  ;;  %v1148_v24 = vld [vmem:[#allocation6 + $0x114] sm:$0xf0]  ;;  %v1055_v25 = vor.u32 %v1405_v21, %v1052_v22  ;;  %v1453_v27 = vld [vmem:[#allocation6 + $0x1cc] sm:$0xf]  ;;  %v1402_v33 = vld [vmem:[#allocation6 + $0x34] sm:$0xf] }
  0x31   :  { %825 = vmatpush.bf16.msra.mxu3 %v1303_v48  ;;  %v1151_v26 = vor.u32 %v1429_v23, %v1148_v24  ;;  %v1244_v28 = vld [vmem:[#allocation6 + $0x1d4] sm:$0xf0]  ;;  %v1477_v29 = vld [vmem:[#allocation6 + $0x28c] sm:$0xf]  ;;  %v1040_v34 = vld [vmem:[#allocation6 + $0x3c] sm:$0xf0] }
  0x32   :  { %831 = vmatpush.bf16.msrb.mxu0 %v1103_v41  ;;  %v1247_v30 = vor.u32 %v1453_v27, %v1244_v28  ;;  %v1340_v31 = vld [vmem:[#allocation6 + $0x294] sm:$0xf0]  ;;  %v1426_v35 = vld [vmem:[#allocation6 + $0xf4] sm:$0xf]  ;;  %v1136_v36 = vld [vmem:[#allocation6 + $0xfc] sm:$0xf0]  ;;  %v1043_v37 = vor.u32 %v1402_v33, %v1040_v34 }
  0x33   :  { %844 = vmatpush.bf16.msrb.mxu1 %v1199_v45  ;;  %v1343_v32 = vor.u32 %v1477_v29, %v1340_v31  ;;  %v1139_v38 = vor.u32 %v1426_v35, %v1136_v36  ;;  %v1450_v39 = vld [vmem:[#allocation6 + $0x1b4] sm:$0xf]  ;;  %v1232_v40 = vld [vmem:[#allocation6 + $0x1bc] sm:$0xf0]  ;;  %v1399_v44 = vld [vmem:[#allocation6 + $0x1c] sm:$0xf] }
  0x34   :  { %857 = vmatpush.bf16.msrb.mxu2 %v1295_v49  ;;  %v1474_v41 = vld [vmem:[#allocation6 + $0x274] sm:$0xf]  ;;  %v1235_v42 = vor.u32 %v1450_v39, %v1232_v40  ;;  %v1328_v43 = vld [vmem:[#allocation6 + $0x27c] sm:$0xf0]  ;;  %v1028_v45 = vld [vmem:[#allocation6 + $0x24] sm:$0xf0] }
  0x35   :  { %870 = vmatpush.bf16.msrb.mxu3 %v1391_v52  ;;  %v1331_v46 = vor.u32 %v1474_v41, %v1328_v43  ;;  %v1031_v47 = vor.u32 %v1399_v44, %v1028_v45  ;;  %v1423_v48 = vld [vmem:[#allocation6 + $0xdc] sm:$0xf]  ;;  %v1124_v49 = vld [vmem:[#allocation6 + $0xe4] sm:$0xf0]  ;;  %v1396_v57 = vld [vmem:[#allocation6 + $0x4] sm:$0xf] }
  0x36   :  { %832 = vmatpush.bf16.msrb.mxu0 %v1091_v55  ;;  %v1447_v50 = vld [vmem:[#allocation6 + $0x19c] sm:$0xf]  ;;  %v1127_v51 = vor.u32 %v1423_v48, %v1124_v49  ;;  %v1220_v52 = vld [vmem:[#allocation6 + $0x1a4] sm:$0xf0]  ;;  %v1420_v59 = vld [vmem:[#allocation6 + $0xc4] sm:$0xf] }
  0x37   :  { %845 = vmatpush.bf16.msrb.mxu1 %v1187_v58  ;;  %v1471_v53 = vld [vmem:[#allocation6 + $0x25c] sm:$0xf]  ;;  %v1316_v54 = vld [vmem:[#allocation6 + $0x264] sm:$0xf0]  ;;  %v1223_v55 = vor.u32 %v1447_v50, %v1220_v52  ;;  %v1016_v58 = vld [vmem:[#allocation6 + $0xc] sm:$0xf0] }
  0x38   :  { %858 = vmatpush.bf16.msrb.mxu2 %v1283_v61  ;;  %v1319_v56 = vor.u32 %v1471_v53, %v1316_v54  ;;  %v1019_v60 = vor.u32 %v1396_v57, %v1016_v58  ;;  %v1112_v61 = vld [vmem:[#allocation6 + $0xcc] sm:$0xf0]  ;;  %v1444_v62 = vld [vmem:[#allocation6 + $0x184] sm:$0xf]  ;;  %v64_v11 = vld [vmem:[%s1682_s2] sm:$0xf] }
  0x39   :  { %871 = vmatpush.bf16.msrb.mxu3 %v1379_v0  ;;  %v1208_v63 = vld [vmem:[#allocation6 + $0x18c] sm:$0xf0]  ;;  %v1115_v0 = vor.u32 %v1420_v59, %v1112_v61  ;;  %v1468_v3 = vld [vmem:[#allocation6 + $0x244] sm:$0xf]  ;;  %v79_v16 = vperm.slane %v64_v11, 0  ;;  %v82_v19 = vperm.slane %v64_v11, 3 }
  0x3a   :  { %833 = vmatpush.bf16.msrb.mxu0 %v1079_v4  ;;  %v1211_v1 = vor.u32 %v1444_v62, %v1208_v63  ;;  %v1304_v4 = vld [vmem:[#allocation6 + $0x24c] sm:$0xf0]  ;;  %v60_v6 = vld [vmem:[#allocation3] sm:$0xff]  ;;  %v1419_v54 = vld [vmem:[#allocation6 + $0xb8] sm:$0xf0]  ;;  %s1001_s20 = sshll.u32 %s1687_s7, 4  ;;  %s1002_s20 = int_to_ptr.hbm [resolvable:$true] %s1001_s20 }
  0x3b   :  { %846 = vmatpush.bf16.msrb.mxu1 %v1175_v7  ;;  %v1307_v5 = vor.u32 %v1468_v3, %v1304_v4  ;;  %v61_v7 = vld [vmem:[#allocation3 + $0x8] sm:$0xff]  ;;  %v70_v12 = vperm.slane %v60_v6, 0  ;;  %v111_v20 = vperm.slane %v60_v6, 2  ;;  %v95_v28 = vperm.slane %v60_v6, 1  ;;  %v1106_v49 = vld [vmem:[#allocation6 + $0xb0] sm:$0xf] }
  0x3c   :  { %859 = vmatpush.bf16.msrb.mxu2 %v1271_v8  ;;  %v62_v8 = vld [vmem:[#allocation3 + $0x10] sm:$0xff]  ;;  %v112_v21 = vperm.slane %v61_v7, 2  ;;  %v96_v29 = vperm.slane %v61_v7, 1  ;;  %v1467_v58 = vld [vmem:[#allocation6 + $0x238] sm:$0xf0]  ;;  %vm992_vm0 = vcmask 57344  }
  0x3d   :  { %872 = vmatpush.bf16.msrb.mxu3 %v1367_v9  ;;  %v63_v9 = vld [vmem:[#allocation3 + $0x18] sm:$0xff]  ;;  %v72_v14 = vperm.slane %v62_v8, 0  ;;  %v1298_v57 = vld [vmem:[#allocation6 + $0x230] sm:$0xf] }
  0x3e   :  { %834 = vmatpush.bf16.msrb.mxu0 %v1067_v13  ;;  %v71_v13 = vperm.slane %v61_v7, 0  ;;  %v73_v15 = vperm.slane %v63_v9, 0  ;;  %v114_v22 = vperm.slane %v63_v9, 2  ;;  %v98_v31 = vperm.slane %v63_v9, 1  ;;  %v1394_v59 = vld [vmem:[#allocation6 + $0x2f0] sm:$0xf] }
  0x3f   :  { %847 = vmatpush.bf16.msrb.mxu1 %v1163_v17  ;;  %v80_v17 = vperm.slane %v64_v11, 1  ;;  %v1416_v9 = vld [vmem:[#allocation6 + $0xa0] sm:$0xf0] }
  0x40   :  { %860 = vmatpush.bf16.msrb.mxu2 %v1259_v18  ;;  %v81_v18 = vperm.slane %v64_v11, 2 }
  0x41   :  { %873 = vmatpush.bf16.msrb.mxu3 %v1355_v2  ;;  %v113_v2 = vperm.slane %v62_v8, 2 }
  0x42   :  { %835 = vmatpush.bf16.msrb.mxu0 %v1055_v25 }
  0x43   :  { %848 = vmatpush.bf16.msrb.mxu1 %v1151_v26 }
  0x44   :  { %861 = vmatpush.bf16.msrb.mxu2 %v1247_v30  ;;  %v97_v30 = vperm.slane %v62_v8, 1  ;;  %v1094_v8 = vld [vmem:[#allocation6 + $0x98] sm:$0xf] }
  0x45   :  { %874 = vmatpush.bf16.msrb.mxu3 %v1343_v32 }
  0x46   :  { %836 = vmatpush.bf16.msrb.mxu0 %v1043_v37 }
  0x47   :  { %849 = vmatpush.bf16.msrb.mxu1 %v1139_v38 }
  0x48   :  { %862 = vmatpush.bf16.msrb.mxu2 %v1235_v42 }
  0x49   :  { %875 = vmatpush.bf16.msrb.mxu3 %v1331_v46 }
  0x4a   :  { %837 = vmatpush.bf16.msrb.mxu0 %v1031_v47 }
  0x4b   :  { %850 = vmatpush.bf16.msrb.mxu1 %v1127_v51 }
  0x4c   :  { %863 = vmatpush.bf16.msrb.mxu2 %v1223_v55  ;;  %v1202_v55 = vld [vmem:[#allocation6 + $0x170] sm:$0xf] }
  0x4d   :  { %876 = vmatpush.bf16.msrb.mxu3 %v1319_v56  ;;  %v1443_v56 = vld [vmem:[#allocation6 + $0x178] sm:$0xf0] }
  0x4e   :  { %838 = vmatpush.bf16.msrb.mxu0 %v1019_v60  ;;  %v1203_v3 = vor.u32 %v1443_v56, %v1202_v55  ;;  %v1046_v55 = vld [vmem:[#allocation6 + $0x38] sm:$0xf]  ;;  %v1404_v56 = vld [vmem:[#allocation6 + $0x40] sm:$0xf0] }
  0x4f   :  { %851 = vmatpush.bf16.msrb.mxu1 %v1115_v0  ;;  %v1491_v0 = vld [vmem:[#allocation6 + $0x2f8] sm:$0xf0] }
  0x50   :  { %864 = vmatpush.bf16.msrb.mxu2 %v1211_v1  ;;  %v1107_v1 = vor.u32 %v1419_v54, %v1106_v49  ;;  %v1395_v11 = vor.u32 %v1491_v0, %v1394_v59  ;;  %v1250_v49 = vld [vmem:[#allocation6 + $0x1d0] sm:$0xf]  ;;  %v1142_v59 = vld [vmem:[#allocation6 + $0xf8] sm:$0xf]  ;;  %v1476_v0 = vld [vmem:[#allocation6 + $0x280] sm:$0xf0] }
  0x51   :  { %877 = vmatpush.bf16.msrb.mxu3 %v1307_v5 }
  0x82   :  { %v68_v10 = vpop.permute.xlu0 %67  ;;  %v109_v27 = vpop.permute.xlu1 %108 }
  0x83   :  { %v74_v23 = vmul.f32 %v70_v12, %v68_v10  ;;  %v75_v24 = vmul.f32 %v71_v13, %v68_v10  ;;  %v76_v25 = vmul.f32 %v72_v14, %v68_v10  ;;  %v77_v26 = vmul.f32 %v73_v15, %v68_v10  ;;  %v1190_v12 = vld [vmem:[#allocation6 + $0x158] sm:$0xf]  ;;  %v1440_v13 = vld [vmem:[#allocation6 + $0x160] sm:$0xf0] }
  0x84   :  { %v115_v32 = vmul.f32 %v111_v20, %v109_v27  ;;  %v116_v33 = vmul.f32 %v112_v21, %v109_v27  ;;  %v117_v34 = vmul.f32 %v113_v2, %v109_v27  ;;  %v118_v35 = vmul.f32 %v114_v22, %v109_v27  ;;  %v1286_v14 = vld [vmem:[#allocation6 + $0x218] sm:$0xf]  ;;  %v1464_v15 = vld [vmem:[#allocation6 + $0x220] sm:$0xf0]  ;;  %v1082_v20 = vld [vmem:[#allocation6 + $0x80] sm:$0xf] }
  0x85   :  { %v87_v36 = vadd.f32 %v79_v16, %v74_v23  ;;  %v88_v37 = vadd.f32 %v80_v17, %v75_v24  ;;  %v89_v38 = vadd.f32 %v81_v18, %v76_v25  ;;  %v90_v39 = vadd.f32 %v82_v19, %v77_v26  ;;  %v1382_v16 = vld [vmem:[#allocation6 + $0x2d8] sm:$0xf]  ;;  %v1488_v17 = vld [vmem:[#allocation6 + $0x2e0] sm:$0xf0]  ;;  %v1413_v21 = vld [vmem:[#allocation6 + $0x88] sm:$0xf0] }
  0x86   :  { %v1299_v10 = vor.u32 %v1467_v58, %v1298_v57  ;;  %v1095_v18 = vor.u32 %v1416_v9, %v1094_v8  ;;  %v1191_v19 = vor.u32 %v1440_v13, %v1190_v12  ;;  %v1287_v2 = vor.u32 %v1464_v15, %v1286_v14  ;;  %v1178_v23 = vld [vmem:[#allocation6 + $0x140] sm:$0xf]  ;;  %v1437_v24 = vld [vmem:[#allocation6 + $0x148] sm:$0xf0] }
  0x87   :  { %v1383_v22 = vor.u32 %v1488_v17, %v1382_v16  ;;  %v1274_v25 = vld [vmem:[#allocation6 + $0x200] sm:$0xf]  ;;  %v1461_v26 = vld [vmem:[#allocation6 + $0x208] sm:$0xf0] }
  0x88   :  { %v1370_v27 = vld [vmem:[#allocation6 + $0x2c0] sm:$0xf]  ;;  %v1401_v9 = vld [vmem:[#allocation6 + $0x28] sm:$0xf0] }
  0x89   :  { %v1034_v8 = vld [vmem:[#allocation6 + $0x20] sm:$0xf]  ;;  %v1425_v13 = vld [vmem:[#allocation6 + $0xe8] sm:$0xf0] }
  0x8a   :  { %v1130_v12 = vld [vmem:[#allocation6 + $0xe0] sm:$0xf]  ;;  %v1449_v15 = vld [vmem:[#allocation6 + $0x1a8] sm:$0xf0] }
  0x8b   :  { %v93_v40 = vpop.permute.xlu0 %92  ;;  %v1226_v14 = vld [vmem:[#allocation6 + $0x1a0] sm:$0xf]  ;;  %v1473_v17 = vld [vmem:[#allocation6 + $0x268] sm:$0xf0] }
  0x8c   :  { %v99_v41 = vmul.f32 %v95_v28, %v93_v40  ;;  %v100_v42 = vmul.f32 %v96_v29, %v93_v40  ;;  %v101_v43 = vmul.f32 %v97_v30, %v93_v40  ;;  %v102_v44 = vmul.f32 %v98_v31, %v93_v40  ;;  %v1485_v28 = vld [vmem:[#allocation6 + $0x2c8] sm:$0xf0]  ;;  %v1070_v31 = vld [vmem:[#allocation6 + $0x68] sm:$0xf]  ;;  %v1482_v40 = vld [vmem:[#allocation6 + $0x2b0] sm:$0xf0] }
  0x8d   :  { %v1083_v29 = vor.u32 %v1413_v21, %v1082_v20  ;;  %v1179_v30 = vor.u32 %v1437_v24, %v1178_v23  ;;  %v1322_v16 = vld [vmem:[#allocation6 + $0x260] sm:$0xf]  ;;  %v1022_v20 = vld [vmem:[#allocation6 + $0x8] sm:$0xf]  ;;  %v1398_v21 = vld [vmem:[#allocation6 + $0x10] sm:$0xf0] }
  0x8e   :  { %v103_v45 = vadd.f32 %v99_v41, %v87_v36  ;;  %v104_v46 = vadd.f32 %v100_v42, %v88_v37  ;;  %v105_v47 = vadd.f32 %v101_v43, %v89_v38  ;;  %v106_v48 = vadd.f32 %v102_v44, %v90_v39  ;;  %v1434_v36 = vld [vmem:[#allocation6 + $0x130] sm:$0xf0]  ;;  %v1262_v37 = vld [vmem:[#allocation6 + $0x1e8] sm:$0xf]  ;;  %v1058_v43 = vld [vmem:[#allocation6 + $0x50] sm:$0xf] }
  0x8f   :  { %v1458_v38 = vld [vmem:[#allocation6 + $0x1f0] sm:$0xf0]  ;;  %v1358_v39 = vld [vmem:[#allocation6 + $0x2a8] sm:$0xf]  ;;  %v1407_v44 = vld [vmem:[#allocation6 + $0x58] sm:$0xf0] }
  0x90   :  { %v119_v50 = vadd.f32 %v115_v32, %v103_v45  ;;  %v120_v51 = vadd.f32 %v116_v33, %v104_v46  ;;  %v121_v52 = vadd.f32 %v117_v34, %v105_v47  ;;  %v122_v53 = vadd.f32 %v118_v35, %v106_v48  ;;  %v1410_v32 = vld [vmem:[#allocation6 + $0x70] sm:$0xf0]  ;;  %v1166_v35 = vld [vmem:[#allocation6 + $0x128] sm:$0xf]  ;;  %v1154_v47 = vld [vmem:[#allocation6 + $0x110] sm:$0xf] }
  0x91   :  { %v1275_v33 = vor.u32 %v1461_v26, %v1274_v25  ;;  %v1371_v34 = vor.u32 %v1485_v28, %v1370_v27  ;;  %v1071_v41 = vor.u32 %v1410_v32, %v1070_v31  ;;  %v1167_v42 = vor.u32 %v1434_v36, %v1166_v35  ;;  %v1431_v48 = vld [vmem:[#allocation6 + $0x118] sm:$0xf0]  ;;  %v1118_v23 = vld [vmem:[#allocation6 + $0xc8] sm:$0xf]  ;;  %v1422_v24 = vld [vmem:[#allocation6 + $0xd0] sm:$0xf0] }
  0x92   :  { %v123_v60 = vmax.f32 %v119_v50, 0.0  ;;  %v124_v61 = vmax.f32 %v120_v51, 0.0  ;;  %v125_v62 = vmax.f32 %v121_v52, 0.0  ;;  %v126_v63 = vmax.f32 %v122_v53, 0.0  ;;  %v1455_v50 = vld [vmem:[#allocation6 + $0x1d8] sm:$0xf0] }
  0x93   :  { %v1263_v45 = vor.u32 %v1458_v38, %v1262_v37  ;;  %v1359_v46 = vor.u32 %v1482_v40, %v1358_v39  ;;  %v1346_v51 = vld [vmem:[#allocation6 + $0x290] sm:$0xf]  ;;  %v1479_v52 = vld [vmem:[#allocation6 + $0x298] sm:$0xf0]  ;;  %v1059_v53 = vor.u32 %v1407_v44, %v1058_v43  ;;  %v1155_v54 = vor.u32 %v1431_v48, %v1154_v47  ;;  %v1214_v25 = vld [vmem:[#allocation6 + $0x188] sm:$0xf] }
  0x94   :  { %v1651_v4 = vpack.c.bf16 %v123_v60, %v123_v60  ;;  %v1653_v5 = vpack.c.bf16 %v124_v61, %v124_v61  ;;  %v1655_v6 = vpack.c.bf16 %v125_v62, %v125_v62  ;;  %v1657_v7 = vpack.c.bf16 %v126_v63, %v126_v63  ;;  %v1428_v60 = vld [vmem:[#allocation6 + $0x100] sm:$0xf0]  ;;  %v1238_v61 = vld [vmem:[#allocation6 + $0x1b8] sm:$0xf]  ;;  %v1446_v26 = vld [vmem:[#allocation6 + $0x190] sm:$0xf0] }
  0x95   :  { %v1251_v57 = vor.u32 %v1455_v50, %v1250_v49  ;;  %v1347_v58 = vor.u32 %v1479_v52, %v1346_v51  ;;  %v1452_v62 = vld [vmem:[#allocation6 + $0x1c0] sm:$0xf0]  ;;  %v1334_v63 = vld [vmem:[#allocation6 + $0x278] sm:$0xf]  ;;  %v1310_v27 = vld [vmem:[#allocation6 + $0x248] sm:$0xf]  ;;  %v1215_v31 = vor.u32 %v1446_v26, %v1214_v25 }
  0x96   :  { %787 = vmatmul.bf16.vlgmr.msra.gmra.mxu0 %v1651_v4  ;;  %800 = vmatmul.bf16.vlgmr.msra.gmra.mxu1 %v1653_v5  ;;  %v1470_v28 = vld [vmem:[#allocation6 + $0x250] sm:$0xf0] }
  0x97   :  { %813 = vmatmul.bf16.vlgmr.msra.gmra.mxu2 %v1655_v6  ;;  %826 = vmatmul.bf16.vlgmr.msra.gmra.mxu3 %v1657_v7  ;;  %v1311_v32 = vor.u32 %v1470_v28, %v1310_v27 }
  0x98   :  { %883 = vmatpush.bf16.msra.mxu0 %v1107_v1  ;;  %896 = vmatpush.bf16.msra.mxu1 %v1203_v3  ;;  %v1047_v1 = vor.u32 %v1404_v56, %v1046_v55  ;;  %v1143_v3 = vor.u32 %v1428_v60, %v1142_v59  ;;  %v938_v60 = vld [vmem:[%s1685_s5] sm:$0x7]  ;;  %s1593_s5 = smov [#allocation8]  }
  0x99   :  { %909 = vmatpush.bf16.msra.mxu2 %v1299_v10  ;;  %922 = vmatpush.bf16.msra.mxu3 %v1395_v11  ;;  %v1239_v10 = vor.u32 %v1452_v62, %v1238_v61  ;;  %v1335_v11 = vor.u32 %v1476_v0, %v1334_v63  ;;  %v941_v62 = vperm.slane %v938_v60, 1  ;;  %s999_s17 = sshll.u32 %s1593_s5, 4  ;;  %s1000_s17 = int_to_ptr.vmem [resolvable:$true] %s999_s17 }
  0x9c   :  { %884 = vmatpush.bf16.msra.mxu0 %v1095_v18  ;;  %897 = vmatpush.bf16.msra.mxu1 %v1191_v19  ;;  %v1035_v18 = vor.u32 %v1401_v9, %v1034_v8  ;;  %v1131_v19 = vor.u32 %v1425_v13, %v1130_v12  ;;  %v940_v8 = vperm.slane %v938_v60, 0 }
  0x9d   :  { %910 = vmatpush.bf16.msra.mxu2 %v1287_v2  ;;  %923 = vmatpush.bf16.msra.mxu3 %v1383_v22  ;;  %v1227_v2 = vor.u32 %v1449_v15, %v1226_v14  ;;  %v1323_v22 = vor.u32 %v1473_v17, %v1322_v16  ;;  %v942_v14 = vperm.slane %v938_v60, 2 }
  0xa0   :  { %885 = vmatpush.bf16.msra.mxu0 %v1083_v29  ;;  %898 = vmatpush.bf16.msra.mxu1 %v1179_v30  ;;  %v1023_v29 = vor.u32 %v1398_v21, %v1022_v20  ;;  %v1119_v30 = vor.u32 %v1422_v24, %v1118_v23 }
  0xa1   :  { %911 = vmatpush.bf16.msra.mxu2 %v1275_v33  ;;  %924 = vmatpush.bf16.msra.mxu3 %v1371_v34 }
  0xa4   :  { %886 = vmatpush.bf16.msra.mxu0 %v1071_v41  ;;  %899 = vmatpush.bf16.msra.mxu1 %v1167_v42 }
  0xa5   :  { %912 = vmatpush.bf16.msra.mxu2 %v1263_v45  ;;  %925 = vmatpush.bf16.msra.mxu3 %v1359_v46 }
  0xa6   :  { %839 = vmatmul.bf16.vlgmr.msrb.gmra.mxu0 %v1651_v4  ;;  %852 = vmatmul.bf16.vlgmr.msrb.gmra.mxu1 %v1653_v5 }
  0xa7   :  { %865 = vmatmul.bf16.vlgmr.msrb.gmra.mxu2 %v1655_v6  ;;  %878 = vmatmul.bf16.vlgmr.msrb.gmra.mxu3 %v1657_v7 }
  0xa8   :  { %887 = vmatpush.bf16.msra.mxu0 %v1059_v53  ;;  %900 = vmatpush.bf16.msra.mxu1 %v1155_v54 }
  0xa9   :  { %913 = vmatpush.bf16.msra.mxu2 %v1251_v57  ;;  %926 = vmatpush.bf16.msra.mxu3 %v1347_v58 }
  0xac   :  { %888 = vmatpush.bf16.msra.mxu0 %v1047_v1  ;;  %901 = vmatpush.bf16.msra.mxu1 %v1143_v3 }
  0xad   :  { %914 = vmatpush.bf16.msra.mxu2 %v1239_v10  ;;  %927 = vmatpush.bf16.msra.mxu3 %v1335_v11 }
  0xb0   :  { %889 = vmatpush.bf16.msra.mxu0 %v1035_v18  ;;  %902 = vmatpush.bf16.msra.mxu1 %v1131_v19 }
  0xb1   :  { %915 = vmatpush.bf16.msra.mxu2 %v1227_v2  ;;  %928 = vmatpush.bf16.msra.mxu3 %v1323_v22  ;;  %v1505_v2 = vld [vmem:[#allocation2] ss:$0 sm:$0xff] }
  0xb4   :  { %890 = vmatpush.bf16.msra.mxu0 %v1023_v29  ;;  %903 = vmatpush.bf16.msra.mxu1 %v1119_v30 }
  0xb5   :  { %916 = vmatpush.bf16.msra.mxu2 %v1215_v31  ;;  %929 = vmatpush.bf16.msra.mxu3 %v1311_v32 }
  0xb7   :  { %891 = vmatmul.bf16.vlgmr.msra.gmra.mxu0 %v1651_v4  ;;  %904 = vmatmul.bf16.vlgmr.msra.gmra.mxu1 %v1653_v5  ;;  %v259_v4 = vld [vmem:[%s1684_s4] sm:$0x7] }
  0xb8   :  { %917 = vmatmul.bf16.vlgmr.msra.gmra.mxu2 %v1655_v6  ;;  %930 = vmatmul.bf16.vlgmr.msra.gmra.mxu3 %v1657_v7  ;;  %v262_v43 = vperm.slane %v259_v4, 1  ;;  %v261_v5 = vperm.slane %v259_v4, 0  ;;  %v263_v53 = vperm.slane %v259_v4, 2 }
 0x113   :  { %v788_v33 = vpop.f32.mrf.mxu0  ;;  %v801_v34 = vpop.f32.mrf.mxu1 }
 0x114   :  { %v789_v47 = vadd.f32 %v788_v33, %v261_v5 }
 0x116   :  { %v802_v49 = vadd.f32 %v801_v34, %v789_v47 }
 0x11a   :  { %v814_v35 = vpop.f32.mrf.mxu2  ;;  %v827_v36 = vpop.f32.mrf.mxu3 }
 0x11b   :  { %v790_v37 = vpop.f32.mrf.mxu0  ;;  %v803_v38 = vpop.f32.mrf.mxu1  ;;  %v815_v54 = vadd.f32 %v814_v35, %v802_v49 }
 0x11d   :  { %v828_v59 = vadd.f32 %v827_v36, %v815_v54 }
 0x11f   :  { %v935_v3 = vmax.f32 %v828_v59, 0.0 }
 0x121   :  { %v946_v15 = vmul.f32 %v940_v8, %v935_v3 }
 0x122   :  { %v816_v39 = vpop.f32.mrf.mxu2  ;;  %v829_v40 = vpop.f32.mrf.mxu3 }
 0x123   :  { %v840_v41 = vpop.f32.mrf.mxu0  ;;  %v853_v42 = vpop.f32.mrf.mxu1 }
 0x124   :  { %v841_v46 = vadd.f32 %v840_v41, %v262_v43 }
 0x126   :  { %v854_v48 = vadd.f32 %v853_v42, %v841_v46 }
 0x12a   :  { %v866_v44 = vpop.f32.mrf.mxu2  ;;  %v879_v6 = vpop.f32.mrf.mxu3 }
 0x12b   :  { %v842_v45 = vpop.f32.mrf.mxu0  ;;  %v855_v7 = vpop.f32.mrf.mxu1  ;;  %v867_v50 = vadd.f32 %v866_v44, %v854_v48 }
 0x12d   :  { %v880_v57 = vadd.f32 %v879_v6, %v867_v50 }
 0x12f   :  { %v936_v61 = vmax.f32 %v880_v57, 0.0 }
 0x131   :  { %v947_v12 = vmul.f32 %v941_v62, %v936_v61 }
 0x132   :  { %v868_v51 = vpop.f32.mrf.mxu2  ;;  %v881_v52 = vpop.f32.mrf.mxu3 }
 0x133   :  { %v949_v18 = vadd.f32 %v947_v12, %v946_v15 }
 0x134   :  { %v892_v55 = vpop.f32.mrf.mxu0  ;;  %v905_v56 = vpop.f32.mrf.mxu1 }
 0x135   :  { %v893_v58 = vadd.f32 %v892_v55, %v263_v53 }
 0x137   :  { %v906_v63 = vadd.f32 %v905_v56, %v893_v58 }
 0x13b   :  { %v918_v0 = vpop.f32.mrf.mxu2  ;;  %v931_v1 = vpop.f32.mrf.mxu3 }
 0x13c   :  { %v919_v9 = vadd.f32 %v918_v0, %v906_v63  ;;  %v894_v10 = vpop.f32.mrf.mxu0  ;;  %v907_v11 = vpop.f32.mrf.mxu1 }
 0x13e   :  { %v932_v13 = vadd.f32 %v931_v1, %v919_v9 }
 0x140   :  { %v937_v16 = vmax.f32 %v932_v13, 0.0 }
 0x142   :  { %v948_v17 = vmul.f32 %v942_v14, %v937_v16 }
 0x143   :  { %v920_v19 = vpop.f32.mrf.mxu2  ;;  %v933_v20 = vpop.f32.mrf.mxu3 }
 0x144   :  { %v950_v21 = vadd.f32 %v949_v18, %v948_v17 }
 0x146   :  { %951 = vadd.xlane.f32.xlu1 %v950_v21 }
 0x1b9   :  { %v952_v22 = vpop.xlane.xlu1 %951 }
 0x1ba   :  { %v957_v23 = vadd.f32 %v1505_v2, %v952_v22 }
 0x1bc   :  { %1506 = vtanh.f32 %v957_v23 }
 0x1c2   :  { %v1507_v24 = vpop.eup %1506 }
 0x1c3   :  { %v959_v25 = vmul.f32 2.0, %v1507_v24 }
 0x1c5   :  { %960 = vxpose.xlu2.b32.start.end [1/1] (short) (narrow) %v959_v25, 8 }
 0x25e   :  { %v976_v26 = vpop.trf.xlu2 }
 0x25f   :  { %993 = vst.msk [vmem:[#allocation8] sm:$0x1] %vm992_vm0, %v976_v26 }
 0x260   :  { %1004 = dma.vmem_to_hbm [thread:$0]  %s1000_s17, 16, %s1002_s20, [#allocation5]  }
 0x261   :  { %1584 = dma.done.wait [#allocation5], 16  }
 0x262   :  { %1585 = vsyncadd [#allocation5], 4294967280 }
 0x263   :  { %1009 = vsyncpa [#allocation4], 1 }
 0x264   :  { %1010 = vsyncpa [#allocation7], 1 }
 0x265   :  { %1011 = vsyncpa [#allocation5], 1 }

</bundles_post_ra>
